<compile_context>
chip_gen: v7x
topology: tpu7x:2x2x1
jax: 0.10.0
libtpu: 0.0.40
codegen_flags: <defaults>
</compile_context>

<pallas_src>
import functools
import math

import numpy as np
import jax
import jax.numpy as jnp
from jax.experimental import pallas as pl
from jax.experimental.pallas import tpu as pltpu

# ---- model sizes (consistent with the module's __init__) --------------------
NB_FILTERS = 4        # nb_of_filters
NB_HIDDEN = 32        # nb_of_hidden_nodes
OUT_DIM = 3           # out_dimension
NB_EDGES = 6          # nb_of_edges
NB_POINTS = 5         # nb_of_points
BATCH = 8

H_TOTAL = NB_EDGES + 1 + NB_POINTS            # H dim of the NCHW input (12)
D_POLY = 2 * (NB_EDGES + 1)                   # 14 flattened polygon coords
D_INNER = 2 * NB_POINTS                       # 10 flattened inner-point coords
D_CONV = NB_FILTERS * (NB_EDGES - 1) * 2      # 40 flattened conv-branch features
D_FEAT = D_CONV + D_INNER                     # 50 = fc input width
D_IN = 2 * H_TOTAL                            # 24 flattened kernel input width
OUT_PAD = 128                                 # lane-dense padded output width
EPS = 1e-5

# rows of the packed (16, 128) parameter slab
R_BCONV, R_FLOOR = 0, 1
R_BN0_G, R_BN0_B = 2, 3
R_B1, R_BN1_G, R_BN1_B = 4, 5, 6
R_B2, R_BN2_G, R_BN2_B = 7, 8, 9
R_B3, R_BN3_G, R_BN3_B = 10, 11, 12
R_B4 = 13
N_VEC_ROWS = 16

# f32 HIGHEST dots are used only in the pure-JAX reference.
_dot_ref = functools.partial(jnp.dot, preferred_element_type=jnp.float32,
                             precision=jax.lax.Precision.HIGHEST)


# ---- the Pallas kernel -------------------------------------------------------
def _alt_conv_net_kernel(x_ref, wf_ref, w1_ref, w2_ref, w3_ref, w4_ref, vec_ref,
                         out_ref):
    x = x_ref[...]                                    # (N, 24) flattened NCHW row

    def vec(row, width):                              # static slice of the param slab
        return vec_ref[row:row + 1, :width]           # (1, width)

    # Fused front-end: one MXU pass produces both max-pool operands for every
    # (filter, edge, coord) conv output AND passes the inner points through.
    y = jnp.dot(x, wf_ref[...], preferred_element_type=jnp.float32)   # (N, 100)
    feat = jnp.maximum(                                                # (N, 50)
        jnp.maximum(y[:, :D_FEAT], y[:, D_FEAT:]) + vec(R_BCONV, D_FEAT),  # pool + conv bias
        vec(R_FLOOR, D_FEAT))            # floor = 0 on conv cols (ReLU), -1e30 on inner cols

    def bn(h, g_row, b_row):
        # BatchNorm1d, training mode, single reduction pass over the batch axis.
        w = h.shape[1]
        mean = jnp.mean(h, axis=0, keepdims=True)
        var = jnp.maximum(jnp.mean(h * h, axis=0, keepdims=True) - mean * mean, 0.0)
        return (h - mean) * jax.lax.rsqrt(var + EPS) * vec(g_row, w) + vec(b_row, w)

    def fc(h, g_row, b_row, w_ref, bias_row, width):
        return (jnp.dot(bn(h, g_row, b_row), w_ref[...],
                        preferred_element_type=jnp.float32) + vec(bias_row, width))

    h = jnp.tanh(fc(feat, R_BN0_G, R_BN0_B, w1_ref, R_B1, NB_HIDDEN))
    h = jnp.tanh(fc(h, R_BN1_G, R_BN1_B, w2_ref, R_B2, NB_HIDDEN))
    h = jnp.tanh(fc(h, R_BN2_G, R_BN2_B, w3_ref, R_B3, NB_HIDDEN))
    out_ref[...] = fc(h, R_BN3_G, R_BN3_B, w4_ref, R_B4, OUT_PAD)      # (N, 128) lane-dense


# ---- host-side parameter folding: run ONCE, not per forward call -------------
def prepare_inputs(params):
    cw = np.asarray(params["conv_w"], np.float32)          # (F, 2) == weight[f, 0, kh, 0]
    cb = np.asarray(params["conv_b"], np.float32)          # (F,)

    # Fused front-end weight: columns [0:50] = pool operand "a" (conv row e | inner),
    # columns [50:100] = pool operand "b" (conv row e+1 | inner).
    wf = np.zeros((D_IN, 2 * D_FEAT), np.float32)
    bias_front = np.zeros(D_FEAT, np.float32)
    floor = np.zeros(D_FEAT, np.float32)
    floor[D_CONV:] = -1e30                                  # no ReLU on inner points
    for f in range(NB_FILTERS):
        for e in range(NB_EDGES - 1):
            for w in range(2):
                j = (f * (NB_EDGES - 1) + e) * 2 + w        # PyTorch (f, e, w) flatten order
                wf[2 * e + w, j] += cw[f, 0]                # conv output at row e
                wf[2 * (e + 1) + w, j] += cw[f, 1]
                wf[2 * (e + 1) + w, D_FEAT + j] += cw[f, 0] # conv output at row e+1 (pool partner)
                wf[2 * (e + 2) + w, D_FEAT + j] += cw[f, 1]
                bias_front[j] = cb[f]
    for k in range(D_INNER):                                # inner-point pass-through
        wf[D_POLY + k, D_CONV + k] = 1.0
        wf[D_POLY + k, D_FEAT + D_CONV + k] = 1.0

    # Pack all small vectors into one (16, 128) slab.
    vecs = np.zeros((N_VEC_ROWS, OUT_PAD), np.float32)

    def put(row, v):
        v = np.asarray(v, np.float32).ravel()
        vecs[row, :v.size] = v

    put(R_BCONV, bias_front); put(R_FLOOR, floor)
    put(R_BN0_G, params["bn0_g"]); put(R_BN0_B, params["bn0_b"])
    put(R_B1, params["b1"]); put(R_BN1_G, params["bn1_g"]); put(R_BN1_B, params["bn1_b"])
    put(R_B2, params["b2"]); put(R_BN2_G, params["bn2_g"]); put(R_BN2_B, params["bn2_b"])
    put(R_B3, params["b3"]); put(R_BN3_G, params["bn3_g"]); put(R_BN3_B, params["bn3_b"])
    put(R_B4, params["b4"])

    w4p = np.zeros((NB_HIDDEN, OUT_PAD), np.float32)        # lane-dense padded head weight
    w4p[:, :OUT_DIM] = np.asarray(params["w4"], np.float32)

    return (jnp.asarray(wf),
            jnp.asarray(params["w1"], jnp.float32),
            jnp.asarray(params["w2"], jnp.float32),
            jnp.asarray(params["w3"], jnp.float32),
            jnp.asarray(w4p),
            jnp.asarray(vecs))


# ---- forward wrapper ---------------------------------------------------------
def alt_2d_conv_net_forward(x, prepared):
    n = x.shape[0]
    xf = x[:, 0, :, :].reshape(n, D_IN).astype(jnp.float32)     # (N, 24)
    wf, w1, w2, w3, w4p, vecs = prepared

    vmem = pltpu.MemorySpace.VMEM
    out = pl.pallas_call(
        _alt_conv_net_kernel,
        out_shape=jax.ShapeDtypeStruct((n, OUT_PAD), jnp.float32),
        in_specs=[pl.BlockSpec(memory_space=vmem)] * 7,          # whole arrays, no grid,
        out_specs=pl.BlockSpec(memory_space=vmem),               # no pipelining machinery
    )(xf, wf, w1, w2, w3, w4p, vecs)
    return out[:, :OUT_DIM]


# ---- pure-JAX f32 reference mirroring the PyTorch forward --------------------
def reference_forward(x, params):
    n = x.shape[0]
    poly = x[:, 0, :NB_EDGES + 1, :]                                     # (N, E+1, 2)
    inner = x[:, 0, NB_EDGES + 1:NB_EDGES + 1 + NB_POINTS, :].reshape(n, D_INNER)
    cw, cb = params["conv_w"], params["conv_b"]
    conv = (cw[None, :, 0, None, None] * poly[:, None, :NB_EDGES, :]
            + cw[None, :, 1, None, None] * poly[:, None, 1:, :]
            + cb[None, :, None, None])                                   # (N, F, E, 2)
    pool = jnp.maximum(conv[:, :, :NB_EDGES - 1, :], conv[:, :, 1:, :])  # MaxPool2d((2,1), stride=1)
    feat_c = jnp.maximum(pool, 0.0).reshape(n, D_CONV)                   # ReLU + view
    feat = jnp.concatenate([feat_c, inner], axis=1)

    def bn(h, g, b):
        m = jnp.mean(h, axis=0, keepdims=True)
        v = jnp.mean((h - m) ** 2, axis=0, keepdims=True)
        return (h - m) * jax.lax.rsqrt(v + EPS) * g + b

    h = feat
    h = jnp.tanh(_dot_ref(bn(h, params["bn0_g"], params["bn0_b"]), params["w1"]) + params["b1"])
    h = jnp.tanh(_dot_ref(bn(h, params["bn1_g"], params["bn1_b"]), params["w2"]) + params["b2"])
    h = jnp.tanh(_dot_ref(bn(h, params["bn2_g"], params["bn2_b"]), params["w3"]) + params["b3"])
    return _dot_ref(bn(h, params["bn3_g"], params["bn3_b"]), params["w4"]) + params["b4"]


# ---- deterministic parameter init (matches __init__ shapes / defaults) -------
def init_params(key):
    d0 = D_CONV + D_INNER
    ks = jax.random.split(key, 10)

    def u(k, shape, fan_in):
        bound = 1.0 / math.sqrt(fan_in)
        return jax.random.uniform(k, shape, jnp.float32, -bound, bound)

    ones = lambda d: jnp.ones((d,), jnp.float32)
    zeros = lambda d: jnp.zeros((d,), jnp.float32)
    return {
        "conv_w": u(ks[0], (NB_FILTERS, 2), 2),     # Conv2d(1, F, kernel=(2,1)) weight[:,0,:,0]
        "conv_b": u(ks[1], (NB_FILTERS,), 2),
        "bn0_g": ones(d0), "bn0_b": zeros(d0),
        "w1": u(ks[2], (d0, NB_HIDDEN), d0), "b1": u(ks[3], (NB_HIDDEN,), d0),
        "bn1_g": ones(NB_HIDDEN), "bn1_b": zeros(NB_HIDDEN),
        "w2": u(ks[4], (NB_HIDDEN, NB_HIDDEN), NB_HIDDEN), "b2": u(ks[5], (NB_HIDDEN,), NB_HIDDEN),
        "bn2_g": ones(NB_HIDDEN), "bn2_b": zeros(NB_HIDDEN),
        "w3": u(ks[6], (NB_HIDDEN, NB_HIDDEN), NB_HIDDEN), "b3": u(ks[7], (NB_HIDDEN,), NB_HIDDEN),
        "bn3_g": ones(NB_HIDDEN), "bn3_b": zeros(NB_HIDDEN),
        "w4": u(ks[8], (NB_HIDDEN, OUT_DIM), NB_HIDDEN), "b4": u(ks[9], (OUT_DIM,), NB_HIDDEN),
    }
    # TODO(synk): BatchNorm running-stat updates (training side effect) are not modeled;
    # the forward output uses batch statistics exactly as PyTorch train-mode forward does.


if __name__ == "__main__":
    key = jax.random.PRNGKey(0)
    pkey, xkey = jax.random.split(key)
    params = init_params(pkey)
    prepared = prepare_inputs(params)                     # host glue, done once
    x = jax.random.normal(xkey, (BATCH, 1, H_TOTAL, 2), jnp.float32)   # NCHW, W=2 coords

    fwd = jax.jit(alt_2d_conv_net_forward)
    out = jax.block_until_ready(fwd(x, prepared))
    assert out.shape == (BATCH, OUT_DIM)

    ref = jax.block_until_ready(reference_forward(x, params))
    # Kernel matmuls use single-pass bf16 MXU (default precision) vs the f32
    # HIGHEST reference, and BatchNorm amplifies small differences, hence the
    # slightly relaxed tolerance.
    np.testing.assert_allclose(np.asarray(out), np.asarray(ref), rtol=5e-2, atol=5e-2)

    print("KERNEL_OK")
</pallas_src>

<mosaic_0001>
module attributes {stable_mosaic.version = 11 : i64} {
  func.func @_alt_conv_net_kernel(%arg0: memref<8x24xf32, #tpu.memory_space<vmem>>, %arg1: memref<24x100xf32, #tpu.memory_space<vmem>>, %arg2: memref<50x32xf32, #tpu.memory_space<vmem>>, %arg3: memref<32x32xf32, #tpu.memory_space<vmem>>, %arg4: memref<32x32xf32, #tpu.memory_space<vmem>>, %arg5: memref<32x128xf32, #tpu.memory_space<vmem>>, %arg6: memref<16x128xf32, #tpu.memory_space<vmem>>, %arg7: memref<8x128xf32, #tpu.memory_space<vmem>>) attributes {dimension_semantics = [], scalar_prefetch = 0 : i64, scratch_operands = 0 : i64, tpu.core_type = #tpu.core_type<tc>} {
    %c0 = arith.constant 0 : index
    %c0_0 = arith.constant 0 : index
    %0 = vector.load %arg0[%c0, %c0_0] : memref<8x24xf32, #tpu.memory_space<vmem>>, vector<8x24xf32>
    %c0_1 = arith.constant 0 : index
    %c0_2 = arith.constant 0 : index
    %1 = vector.load %arg1[%c0_1, %c0_2] : memref<24x100xf32, #tpu.memory_space<vmem>>, vector<24x100xf32>
    %cst = arith.constant dense<0.000000e+00> : vector<8x100xf32>
    %2 = tpu.matmul %0, %1, %cst {dimension_numbers = #tpu.dot_dimension_numbers<[1], [0], [0], [1], [0, 0, 1, 1], [], []>} : vector<8x24xf32>, vector<24x100xf32>, vector<8x100xf32> -> vector<8x100xf32>
    %3 = vector.extract_strided_slice %2 {offsets = [0, 0], sizes = [8, 50], strides = [1, 1]} : vector<8x100xf32> to vector<8x50xf32>
    %4 = vector.extract_strided_slice %2 {offsets = [0, 50], sizes = [8, 50], strides = [1, 1]} : vector<8x100xf32> to vector<8x50xf32>
    %5 = arith.maximumf %3, %4 : vector<8x50xf32>
    %c0_3 = arith.constant 0 : index
    %c0_4 = arith.constant 0 : index
    %6 = vector.load %arg6[%c0_3, %c0_4] : memref<16x128xf32, #tpu.memory_space<vmem>>, vector<1x50xf32>
    %7 = vector.broadcast %6 : vector<1x50xf32> to vector<8x50xf32>
    %8 = arith.addf %5, %7 : vector<8x50xf32>
    %c1 = arith.constant 1 : index
    %c0_5 = arith.constant 0 : index
    %9 = vector.load %arg6[%c1, %c0_5] : memref<16x128xf32, #tpu.memory_space<vmem>>, vector<1x50xf32>
    %10 = vector.broadcast %9 : vector<1x50xf32> to vector<8x50xf32>
    %11 = arith.maximumf %8, %10 : vector<8x50xf32>
    %cst_6 = arith.constant dense<0.000000e+00> : vector<50xf32>
    %12 = vector.multi_reduction <add>, %11, %cst_6 [0] : vector<8x50xf32> to vector<50xf32>
    %13 = vector.shape_cast %12 : vector<50xf32> to vector<1x50xf32>
    %cst_7 = arith.constant 8.000000e+00 : f32
    %14 = vector.broadcast %cst_7 : f32 to vector<1x50xf32>
    %15 = arith.divf %13, %14 : vector<1x50xf32>
    %16 = arith.mulf %11, %11 : vector<8x50xf32>
    %cst_8 = arith.constant dense<0.000000e+00> : vector<50xf32>
    %17 = vector.multi_reduction <add>, %16, %cst_8 [0] : vector<8x50xf32> to vector<50xf32>
    %18 = vector.shape_cast %17 : vector<50xf32> to vector<1x50xf32>
    %cst_9 = arith.constant 8.000000e+00 : f32
    %19 = vector.broadcast %cst_9 : f32 to vector<1x50xf32>
    %20 = arith.divf %18, %19 : vector<1x50xf32>
    %21 = arith.mulf %15, %15 : vector<1x50xf32>
    %22 = arith.subf %20, %21 : vector<1x50xf32>
    %cst_10 = arith.constant 0.000000e+00 : f32
    %23 = vector.broadcast %cst_10 : f32 to vector<1x50xf32>
    %24 = arith.maximumf %22, %23 : vector<1x50xf32>
    %25 = vector.broadcast %15 : vector<1x50xf32> to vector<8x50xf32>
    %26 = arith.subf %11, %25 : vector<8x50xf32>
    %cst_11 = arith.constant 9.99999974E-6 : f32
    %27 = vector.broadcast %cst_11 : f32 to vector<1x50xf32>
    %28 = arith.addf %24, %27 : vector<1x50xf32>
    %29 = math.rsqrt %28 : vector<1x50xf32>
    %30 = vector.broadcast %29 : vector<1x50xf32> to vector<8x50xf32>
    %31 = arith.mulf %26, %30 : vector<8x50xf32>
    %c2 = arith.constant 2 : index
    %c0_12 = arith.constant 0 : index
    %32 = vector.load %arg6[%c2, %c0_12] : memref<16x128xf32, #tpu.memory_space<vmem>>, vector<1x50xf32>
    %33 = vector.broadcast %32 : vector<1x50xf32> to vector<8x50xf32>
    %34 = arith.mulf %31, %33 : vector<8x50xf32>
    %c3 = arith.constant 3 : index
    %c0_13 = arith.constant 0 : index
    %35 = vector.load %arg6[%c3, %c0_13] : memref<16x128xf32, #tpu.memory_space<vmem>>, vector<1x50xf32>
    %36 = vector.broadcast %35 : vector<1x50xf32> to vector<8x50xf32>
    %37 = arith.addf %34, %36 : vector<8x50xf32>
    %c0_14 = arith.constant 0 : index
    %c0_15 = arith.constant 0 : index
    %38 = vector.load %arg2[%c0_14, %c0_15] : memref<50x32xf32, #tpu.memory_space<vmem>>, vector<50x32xf32>
    %cst_16 = arith.constant dense<0.000000e+00> : vector<8x32xf32>
    %39 = tpu.matmul %37, %38, %cst_16 {dimension_numbers = #tpu.dot_dimension_numbers<[1], [0], [0], [1], [0, 0, 1, 1], [], []>} : vector<8x50xf32>, vector<50x32xf32>, vector<8x32xf32> -> vector<8x32xf32>
    %c4 = arith.constant 4 : index
    %c0_17 = arith.constant 0 : index
    %40 = vector.load %arg6[%c4, %c0_17] : memref<16x128xf32, #tpu.memory_space<vmem>>, vector<1x32xf32>
    %41 = vector.broadcast %40 : vector<1x32xf32> to vector<8x32xf32>
    %42 = arith.addf %39, %41 : vector<8x32xf32>
    %43 = math.tanh %42 : vector<8x32xf32>
    %cst_18 = arith.constant dense<0.000000e+00> : vector<32xf32>
    %44 = vector.multi_reduction <add>, %43, %cst_18 [0] : vector<8x32xf32> to vector<32xf32>
    %45 = vector.shape_cast %44 : vector<32xf32> to vector<1x32xf32>
    %cst_19 = arith.constant 8.000000e+00 : f32
    %46 = vector.broadcast %cst_19 : f32 to vector<1x32xf32>
    %47 = arith.divf %45, %46 : vector<1x32xf32>
    %48 = arith.mulf %43, %43 : vector<8x32xf32>
    %cst_20 = arith.constant dense<0.000000e+00> : vector<32xf32>
    %49 = vector.multi_reduction <add>, %48, %cst_20 [0] : vector<8x32xf32> to vector<32xf32>
    %50 = vector.shape_cast %49 : vector<32xf32> to vector<1x32xf32>
    %cst_21 = arith.constant 8.000000e+00 : f32
    %51 = vector.broadcast %cst_21 : f32 to vector<1x32xf32>
    %52 = arith.divf %50, %51 : vector<1x32xf32>
    %53 = arith.mulf %47, %47 : vector<1x32xf32>
    %54 = arith.subf %52, %53 : vector<1x32xf32>
    %cst_22 = arith.constant 0.000000e+00 : f32
    %55 = vector.broadcast %cst_22 : f32 to vector<1x32xf32>
    %56 = arith.maximumf %54, %55 : vector<1x32xf32>
    %57 = vector.broadcast %47 : vector<1x32xf32> to vector<8x32xf32>
    %58 = arith.subf %43, %57 : vector<8x32xf32>
    %cst_23 = arith.constant 9.99999974E-6 : f32
    %59 = vector.broadcast %cst_23 : f32 to vector<1x32xf32>
    %60 = arith.addf %56, %59 : vector<1x32xf32>
    %61 = math.rsqrt %60 : vector<1x32xf32>
    %62 = vector.broadcast %61 : vector<1x32xf32> to vector<8x32xf32>
    %63 = arith.mulf %58, %62 : vector<8x32xf32>
    %c5 = arith.constant 5 : index
    %c0_24 = arith.constant 0 : index
    %64 = vector.load %arg6[%c5, %c0_24] : memref<16x128xf32, #tpu.memory_space<vmem>>, vector<1x32xf32>
    %65 = vector.broadcast %64 : vector<1x32xf32> to vector<8x32xf32>
    %66 = arith.mulf %63, %65 : vector<8x32xf32>
    %c6 = arith.constant 6 : index
    %c0_25 = arith.constant 0 : index
    %67 = vector.load %arg6[%c6, %c0_25] : memref<16x128xf32, #tpu.memory_space<vmem>>, vector<1x32xf32>
    %68 = vector.broadcast %67 : vector<1x32xf32> to vector<8x32xf32>
    %69 = arith.addf %66, %68 : vector<8x32xf32>
    %c0_26 = arith.constant 0 : index
    %c0_27 = arith.constant 0 : index
    %70 = vector.load %arg3[%c0_26, %c0_27] : memref<32x32xf32, #tpu.memory_space<vmem>>, vector<32x32xf32>
    %cst_28 = arith.constant dense<0.000000e+00> : vector<8x32xf32>
    %71 = tpu.matmul %69, %70, %cst_28 {dimension_numbers = #tpu.dot_dimension_numbers<[1], [0], [0], [1], [0, 0, 1, 1], [], []>} : vector<8x32xf32>, vector<32x32xf32>, vector<8x32xf32> -> vector<8x32xf32>
    %c7 = arith.constant 7 : index
    %c0_29 = arith.constant 0 : index
    %72 = vector.load %arg6[%c7, %c0_29] : memref<16x128xf32, #tpu.memory_space<vmem>>, vector<1x32xf32>
    %73 = vector.broadcast %72 : vector<1x32xf32> to vector<8x32xf32>
    %74 = arith.addf %71, %73 : vector<8x32xf32>
    %75 = math.tanh %74 : vector<8x32xf32>
    %cst_30 = arith.constant dense<0.000000e+00> : vector<32xf32>
    %76 = vector.multi_reduction <add>, %75, %cst_30 [0] : vector<8x32xf32> to vector<32xf32>
    %77 = vector.shape_cast %76 : vector<32xf32> to vector<1x32xf32>
    %cst_31 = arith.constant 8.000000e+00 : f32
    %78 = vector.broadcast %cst_31 : f32 to vector<1x32xf32>
    %79 = arith.divf %77, %78 : vector<1x32xf32>
    %80 = arith.mulf %75, %75 : vector<8x32xf32>
    %cst_32 = arith.constant dense<0.000000e+00> : vector<32xf32>
    %81 = vector.multi_reduction <add>, %80, %cst_32 [0] : vector<8x32xf32> to vector<32xf32>
    %82 = vector.shape_cast %81 : vector<32xf32> to vector<1x32xf32>
    %cst_33 = arith.constant 8.000000e+00 : f32
    %83 = vector.broadcast %cst_33 : f32 to vector<1x32xf32>
    %84 = arith.divf %82, %83 : vector<1x32xf32>
    %85 = arith.mulf %79, %79 : vector<1x32xf32>
    %86 = arith.subf %84, %85 : vector<1x32xf32>
    %cst_34 = arith.constant 0.000000e+00 : f32
    %87 = vector.broadcast %cst_34 : f32 to vector<1x32xf32>
    %88 = arith.maximumf %86, %87 : vector<1x32xf32>
    %89 = vector.broadcast %79 : vector<1x32xf32> to vector<8x32xf32>
    %90 = arith.subf %75, %89 : vector<8x32xf32>
    %cst_35 = arith.constant 9.99999974E-6 : f32
    %91 = vector.broadcast %cst_35 : f32 to vector<1x32xf32>
    %92 = arith.addf %88, %91 : vector<1x32xf32>
    %93 = math.rsqrt %92 : vector<1x32xf32>
    %94 = vector.broadcast %93 : vector<1x32xf32> to vector<8x32xf32>
    %95 = arith.mulf %90, %94 : vector<8x32xf32>
    %c8 = arith.constant 8 : index
    %c0_36 = arith.constant 0 : index
    %96 = vector.load %arg6[%c8, %c0_36] : memref<16x128xf32, #tpu.memory_space<vmem>>, vector<1x32xf32>
    %97 = vector.broadcast %96 : vector<1x32xf32> to vector<8x32xf32>
    %98 = arith.mulf %95, %97 : vector<8x32xf32>
    %c9 = arith.constant 9 : index
    %c0_37 = arith.constant 0 : index
    %99 = vector.load %arg6[%c9, %c0_37] : memref<16x128xf32, #tpu.memory_space<vmem>>, vector<1x32xf32>
    %100 = vector.broadcast %99 : vector<1x32xf32> to vector<8x32xf32>
    %101 = arith.addf %98, %100 : vector<8x32xf32>
    %c0_38 = arith.constant 0 : index
    %c0_39 = arith.constant 0 : index
    %102 = vector.load %arg4[%c0_38, %c0_39] : memref<32x32xf32, #tpu.memory_space<vmem>>, vector<32x32xf32>
    %cst_40 = arith.constant dense<0.000000e+00> : vector<8x32xf32>
    %103 = tpu.matmul %101, %102, %cst_40 {dimension_numbers = #tpu.dot_dimension_numbers<[1], [0], [0], [1], [0, 0, 1, 1], [], []>} : vector<8x32xf32>, vector<32x32xf32>, vector<8x32xf32> -> vector<8x32xf32>
    %c10 = arith.constant 10 : index
    %c0_41 = arith.constant 0 : index
    %104 = vector.load %arg6[%c10, %c0_41] : memref<16x128xf32, #tpu.memory_space<vmem>>, vector<1x32xf32>
    %105 = vector.broadcast %104 : vector<1x32xf32> to vector<8x32xf32>
    %106 = arith.addf %103, %105 : vector<8x32xf32>
    %107 = math.tanh %106 : vector<8x32xf32>
    %cst_42 = arith.constant dense<0.000000e+00> : vector<32xf32>
    %108 = vector.multi_reduction <add>, %107, %cst_42 [0] : vector<8x32xf32> to vector<32xf32>
    %109 = vector.shape_cast %108 : vector<32xf32> to vector<1x32xf32>
    %cst_43 = arith.constant 8.000000e+00 : f32
    %110 = vector.broadcast %cst_43 : f32 to vector<1x32xf32>
    %111 = arith.divf %109, %110 : vector<1x32xf32>
    %112 = arith.mulf %107, %107 : vector<8x32xf32>
    %cst_44 = arith.constant dense<0.000000e+00> : vector<32xf32>
    %113 = vector.multi_reduction <add>, %112, %cst_44 [0] : vector<8x32xf32> to vector<32xf32>
    %114 = vector.shape_cast %113 : vector<32xf32> to vector<1x32xf32>
    %cst_45 = arith.constant 8.000000e+00 : f32
    %115 = vector.broadcast %cst_45 : f32 to vector<1x32xf32>
    %116 = arith.divf %114, %115 : vector<1x32xf32>
    %117 = arith.mulf %111, %111 : vector<1x32xf32>
    %118 = arith.subf %116, %117 : vector<1x32xf32>
    %cst_46 = arith.constant 0.000000e+00 : f32
    %119 = vector.broadcast %cst_46 : f32 to vector<1x32xf32>
    %120 = arith.maximumf %118, %119 : vector<1x32xf32>
    %121 = vector.broadcast %111 : vector<1x32xf32> to vector<8x32xf32>
    %122 = arith.subf %107, %121 : vector<8x32xf32>
    %cst_47 = arith.constant 9.99999974E-6 : f32
    %123 = vector.broadcast %cst_47 : f32 to vector<1x32xf32>
    %124 = arith.addf %120, %123 : vector<1x32xf32>
    %125 = math.rsqrt %124 : vector<1x32xf32>
    %126 = vector.broadcast %125 : vector<1x32xf32> to vector<8x32xf32>
    %127 = arith.mulf %122, %126 : vector<8x32xf32>
    %c11 = arith.constant 11 : index
    %c0_48 = arith.constant 0 : index
    %128 = vector.load %arg6[%c11, %c0_48] : memref<16x128xf32, #tpu.memory_space<vmem>>, vector<1x32xf32>
    %129 = vector.broadcast %128 : vector<1x32xf32> to vector<8x32xf32>
    %130 = arith.mulf %127, %129 : vector<8x32xf32>
    %c12 = arith.constant 12 : index
    %c0_49 = arith.constant 0 : index
    %131 = vector.load %arg6[%c12, %c0_49] : memref<16x128xf32, #tpu.memory_space<vmem>>, vector<1x32xf32>
    %132 = vector.broadcast %131 : vector<1x32xf32> to vector<8x32xf32>
    %133 = arith.addf %130, %132 : vector<8x32xf32>
    %c0_50 = arith.constant 0 : index
    %c0_51 = arith.constant 0 : index
    %134 = vector.load %arg5[%c0_50, %c0_51] : memref<32x128xf32, #tpu.memory_space<vmem>>, vector<32x128xf32>
    %cst_52 = arith.constant dense<0.000000e+00> : vector<8x128xf32>
    %135 = tpu.matmul %133, %134, %cst_52 {dimension_numbers = #tpu.dot_dimension_numbers<[1], [0], [0], [1], [0, 0, 1, 1], [], []>} : vector<8x32xf32>, vector<32x128xf32>, vector<8x128xf32> -> vector<8x128xf32>
    %c13 = arith.constant 13 : index
    %c0_53 = arith.constant 0 : index
    %136 = vector.load %arg6[%c13, %c0_53] : memref<16x128xf32, #tpu.memory_space<vmem>>, vector<1x128xf32>
    %137 = vector.broadcast %136 : vector<1x128xf32> to vector<8x128xf32>
    %138 = arith.addf %135, %137 : vector<8x128xf32>
    %c0_54 = arith.constant 0 : index
    %c0_55 = arith.constant 0 : index
    %139 = vector.load %arg7[%c0_54, %c0_55] : memref<8x128xf32, #tpu.memory_space<vmem>>, vector<8x128xf32>
    tpu.vector_store %arg7[%c0_54, %c0_55], %138 {strides = array<i32>} : memref<8x128xf32, #tpu.memory_space<vmem>>, vector<8x128xf32>,
    return
  }
}

</mosaic_0001>

<bundles_post_ra>
// kernel: alt_2d_conv_net_forward.1
= control target key start
LH: loop header
LB: loop body
LE: loop exit
PB: predicated region body
PF: predicated region fallthrough
CT: control target
= control target key end

     0   :  { %v765_v0 = vmov 0.0|0.0   ;;  %vm766_vm0 = vmmov 0   ;;  %v767_v3 = vmov 0.0   ;;  %vm30_vm1 = vcmask 195584   ;;  %s768_s19 = smov 78   ;;  %s957_s1 = inlined_call_operand.vmem [shape: f32[24,100], index: 1, kind: input, shape index: {}]   ;;  %s958_s0 = inlined_call_operand.vmem [shape: f32[8,24], index: 0, kind: input, shape index: {}]   ;;  %s959_s2 = inlined_call_operand.vmem [shape: f32[50,32], index: 2, kind: input, shape index: {}]   ;;  %s960_s6 = inlined_call_operand.vmem [shape: f32[16,128], index: 6, kind: input, shape index: {}]   ;;  %s961_s3 = inlined_call_operand.vmem [shape: f32[32,32], index: 3, kind: input, shape index: {}]   ;;  %s962_s4 = inlined_call_operand.vmem [shape: f32[32,32], index: 4, kind: input, shape index: {}]   ;;  %s963_s5 = inlined_call_operand.vmem [shape: f32[32,128], index: 5, kind: input, shape index: {}]   ;;  %s964_s7 = inlined_call_operand.vmem [shape: f32[8,128], index: 7, kind: output, shape index: {}]  }
   0x1   :  { %717 = vmatprep.subr.bf16.mxu0 %v765_v0  ;;  %v27_v1 = vld [vmem:[%s957_s1] sm:$0xff]  ;;  %v28_v2 = vld [vmem:[%s957_s1 + $0x8] sm:$0xff]  ;;  %664 = vmatprep.mubr.msk.f32.mxu0 %vm766_vm0, %v767_v3  ;;  %v29_v5 = vld [vmem:[%s957_s1 + $0x10] sm:$0xff]  ;;  %vm174_vm2 = vcmask 1041408   ;;  %vm121_vm3 = vcmask 408576   ;;  %vm249_vm4 = vcmask 261120  }
   0x2   :  { %v718_v4 = vpack.c.bf16 %v28_v2, %v27_v1  ;;  %720 = vmatprep.subr.bf16.mxu1 %v765_v0  ;;  %681 = vmatprep.mubr.msk.f32.mxu1 %vm766_vm0, %v767_v3  ;;  %v26_v6 = vld [vmem:[%s958_s0] sm:$0xff]  ;;  %v160_v8 = vld [vmem:[%s959_s2 + $0x8] sm:$0xff]  ;;  %v161_v9 = vld [vmem:[%s959_s2 + $0x10] sm:$0xff] }
   0x3   :  { %v159_v7 = vld [vmem:[%s959_s2] sm:$0xff]  ;;  %v162_v11 = vld [vmem:[%s959_s2 + $0x18] sm:$0xff]  ;;  %v164_v14 = vld [vmem:[%s959_s2 + $0x28] sm:$0xff] }
   0x4   :  { %719 = vmatpush3.bf16.msra.mxu0 %v718_v4  ;;  %v721_v10 = vpack.c.bf16 %v160_v8, %v159_v7  ;;  %v724_v12 = vpack.c.bf16 %v162_v11, %v161_v9  ;;  %v163_v13 = vld [vmem:[%s959_s2 + $0x20] sm:$0xff]  ;;  %v165_v18 = vld [vmem:[%s959_s2 + $0x30] sm:$0x3]  ;;  %v287_v54 = vld [vmem:[%s961_s3 + $0x8] sm:$0xff] }
   0x5   :  { %662 = vmatprep.subr.mxu0 %v767_v3  ;;  %v727_v16 = vpack.c.bf16 %v164_v14, %v163_v13  ;;  %v612_v20 = vld [vmem:[%s960_s6] ss:$0 sm:$0xff]  ;;  %v613_v22 = vld [vmem:[%s960_s6 + $0x1] ss:$0 sm:$0xff]  ;;  %v614_v48 = vld [vmem:[%s960_s6 + $0x2] ss:$0 sm:$0xff] }
   0x6   :  { %722 = vmatpush3.bf16.msra.mxu1 %v721_v10  ;;  %v615_v50 = vld [vmem:[%s960_s6 + $0x3] ss:$0 sm:$0xff]  ;;  %v288_v55 = vld [vmem:[%s961_s3 + $0x10] sm:$0xff]  ;;  %v289_v57 = vld [vmem:[%s961_s3 + $0x18] sm:$0xff] }
   0x7   :  { %723 = vmatprep.subr.bf16.mxu1 %v765_v0  ;;  %v286_v53 = vld [vmem:[%s961_s3] sm:$0xff]  ;;  %v733_v58 = vpack.c.bf16 %v289_v57, %v288_v55 }
   0x8   :  { %663 = vmatpush3.msra.mxu0 %v29_v5  ;;  %v730_v56 = vpack.c.bf16 %v287_v54, %v286_v53  ;;  %v616_v59 = vld [vmem:[%s960_s6 + $0x4] ss:$0 sm:$0xff] }
   0x9   :  { %665 = vmatmul.mubr.msk.f32.vlgmr.msra.gmra.mrb[0].mxu0 %vm30_vm1, %v26_v6  ;;  %729 = vmatprep.subr.bf16.mxu0 %v765_v0 }
   0xa   :  { %692 = vmatprep.mubr.msk.f32.mxu0 %vm766_vm0, %v767_v3  ;;  %725 = vmatpush3.bf16.msra.mxu1 %v724_v12 }
   0xb   :  { %726 = vmatprep.subr.bf16.mxu1 %v765_v0  ;;  %731 = vmatpush3.bf16.msra.mxu0 %v730_v56 }
   0xc   :  { %732 = vmatprep.subr.bf16.mxu0 %v765_v0 }
   0xe   :  { %728 = vmatpush3.bf16.msra.mxu1 %v727_v16 }
   0xf   :  { %679 = vmatprep.subr.mxu1 %v767_v3  ;;  %734 = vmatpush3.bf16.msra.mxu0 %v733_v58 }
  0x10   :  { %735 = vmatprep.subr.bf16.mxu0 %v765_v0 }
  0x12   :  { %680 = vmatpush3.msk.msra.mxu1 %vm174_vm2, %v165_v18 }
  0x13   :  { %741 = vmatprep.subr.bf16.mxu1 %v765_v0 }
  0xdc   :  { %v100_v15 = vpop.f32.mrb[0].mxu0 }
  0xdd   :  { %v666_v17 = vpop.f32.mrb[1].mxu0  ;;  %105 = vrot.lane.b32.xlu0 %v100_v15, %s768_s19 }
 0x14f   :  { %v106_v19 = vpop.permute.xlu0 %105 }
 0x150   :  { %v108_v21 = vmax.f32 %v100_v15, %v106_v19 }
 0x152   :  { %v114_v23 = vadd.f32 %v612_v20, %v108_v21 }
 0x154   :  { %v120_v24 = vmax.f32 %v114_v23, %v613_v22 }
 0x156   :  { %v122_v25 = vsel %vm121_vm3, %v120_v24, 0.0  ;;  %v131_v26 = vmul.f32 %v120_v24, %v120_v24 }
 0x157   :  { %v123_v27 = vrot.slane %v122_v25, 4 }
 0x158   :  { %v132_v28 = vsel %vm121_vm3, %v131_v26, 0.0 }
 0x159   :  { %v124_v29 = vadd.f32 %v123_v27, %v122_v25  ;;  %v133_v30 = vrot.slane %v132_v28, 4  ;;  %v619_v25 = vld [vmem:[%s960_s6 + $0x5] ss:$0 sm:$0xff]  ;;  %v620_v27 = vld [vmem:[%s960_s6 + $0x6] ss:$0 sm:$0xff] }
 0x15b   :  { %v125_v31 = vrot.slane %v124_v29, 2  ;;  %v134_v32 = vadd.f32 %v133_v30, %v132_v28  ;;  %v405_v30 = vld [vmem:[%s962_s4] sm:$0xff] }
 0x15d   :  { %v126_v33 = vadd.f32 %v125_v31, %v124_v29  ;;  %v135_v34 = vrot.slane %v134_v32, 2  ;;  %v406_v31 = vld [vmem:[%s962_s4 + $0x8] sm:$0xff] }
 0x15f   :  { %v127_v35 = vrot.slane %v126_v33, 1  ;;  %v136_v36 = vadd.f32 %v135_v34, %v134_v32  ;;  %v407_v32 = vld [vmem:[%s962_s4 + $0x10] sm:$0xff]  ;;  %v408_v34 = vld [vmem:[%s962_s4 + $0x18] sm:$0xff] }
 0x161   :  { %v128_v37 = vadd.f32 %v127_v35, %v126_v33  ;;  %v137_v38 = vrot.slane %v136_v36, 1  ;;  %v736_v33 = vpack.c.bf16 %v406_v31, %v405_v30  ;;  %v739_v35 = vpack.c.bf16 %v408_v34, %v407_v32 }
 0x163   :  { %v130_v39 = vmul.f32 0.125, %v128_v37  ;;  %v138_v40 = vadd.f32 %v137_v38, %v136_v36 }
 0x165   :  { %v139_v41 = vmul.f32 0.125, %v138_v40  ;;  %v140_v42 = vmul.f32 %v130_v39, %v130_v39  ;;  %v143_v46 = vsub.f32 %v120_v24, %v130_v39 }
 0x167   :  { %v141_v43 = vsub.f32 %v139_v41, %v140_v42 }
 0x169   :  { %v142_v44 = vmax.f32 %v141_v43, 0.0 }
 0x16b   :  { %v144_v45 = vadd.f32 1e-05, %v142_v44 }
 0x16d   :  { %751 = vrsqrt.f32 %v144_v45 }
 0x177   :  { %v752_v47 = vpop.eup %751 }
 0x178   :  { %v146_v49 = vmul.f32 %v752_v47, %v143_v46 }
 0x17a   :  { %v152_v51 = vmul.f32 %v614_v48, %v146_v49 }
 0x17c   :  { %v158_v52 = vadd.f32 %v615_v50, %v152_v51 }
 0x17e   :  { %682 = vmatmul.mubr.msk.f32.vlgmr.msra.gmra.mrb[0].mxu1 %vm121_vm3, %v158_v52 }
 0x17f   :  { %714 = vmatprep.mubr.msk.f32.mxu1 %vm766_vm0, %v767_v3 }
 0x251   :  { %v244_v60 = vpop.f32.mrb[0].mxu1 }
 0x252   :  { %v245_v61 = vadd.f32 %v616_v59, %v244_v60  ;;  %v683_v62 = vpop.f32.mrb[1].mxu1 }
 0x254   :  { %753 = vtanh.f32 %v245_v61 }
 0x25e   :  { %v754_v63 = vpop.eup %753 }
 0x25f   :  { %v258_v1 = vmul.f32 %v754_v63, %v754_v63  ;;  %v250_v2 = vsel %vm249_vm4, %v754_v63, 0.0 }
 0x260   :  { %v251_v4 = vrot.slane %v250_v2, 4 }
 0x261   :  { %v259_v5 = vsel %vm249_vm4, %v258_v1, 0.0 }
 0x262   :  { %v252_v6 = vadd.f32 %v251_v4, %v250_v2  ;;  %v260_v7 = vrot.slane %v259_v5, 4  ;;  %v624_v2 = vld [vmem:[%s960_s6 + $0x9] ss:$0 sm:$0xff] }
 0x264   :  { %v253_v8 = vrot.slane %v252_v6, 2  ;;  %v261_v9 = vadd.f32 %v260_v7, %v259_v5  ;;  %v525_v7 = vld [vmem:[%s963_s5 + $0x8] sm:$0xff] }
 0x266   :  { %v254_v10 = vadd.f32 %v253_v8, %v252_v6  ;;  %v262_v11 = vrot.slane %v261_v9, 2  ;;  %v524_v6 = vld [vmem:[%s963_s5] sm:$0xff]  ;;  %v526_v8 = vld [vmem:[%s963_s5 + $0x10] sm:$0xff] }
 0x268   :  { %v255_v12 = vrot.slane %v254_v10, 1  ;;  %v263_v13 = vadd.f32 %v262_v11, %v261_v9  ;;  %v742_v9 = vpack.c.bf16 %v525_v7, %v524_v6 }
 0x26a   :  { %v256_v14 = vadd.f32 %v255_v12, %v254_v10  ;;  %v264_v15 = vrot.slane %v263_v13, 1  ;;  %v527_v10 = vld [vmem:[%s963_s5 + $0x18] sm:$0xff]  ;;  %743 = vmatpush3.bf16.msra.mxu1 %v742_v9  ;;  %v625_v12 = vld [vmem:[%s960_s6 + $0xa] ss:$0 sm:$0xff] }
 0x26b   :  { %v745_v11 = vpack.c.bf16 %v527_v10, %v526_v8  ;;  %744 = vmatprep.subr.bf16.mxu1 %v765_v0 }
 0x26c   :  { %v257_v16 = vmul.f32 0.125, %v256_v14  ;;  %v265_v17 = vadd.f32 %v264_v15, %v263_v13 }
 0x26e   :  { %v266_v18 = vmul.f32 0.125, %v265_v17  ;;  %v267_v19 = vmul.f32 %v257_v16, %v257_v16  ;;  %v270_v23 = vsub.f32 %v754_v63, %v257_v16  ;;  %v623_v63 = vld [vmem:[%s960_s6 + $0x8] ss:$0 sm:$0xff]  ;;  %746 = vmatpush3.bf16.msra.mxu1 %v745_v11 }
 0x270   :  { %v268_v20 = vsub.f32 %v266_v18, %v267_v19 }
 0x272   :  { %v269_v21 = vmax.f32 %v268_v20, 0.0 }
 0x274   :  { %v271_v22 = vadd.f32 1e-05, %v269_v21 }
 0x276   :  { %755 = vrsqrt.f32 %v271_v22 }
 0x280   :  { %v756_v24 = vpop.eup %755 }
 0x281   :  { %v273_v26 = vmul.f32 %v756_v24, %v270_v23 }
 0x283   :  { %v279_v28 = vmul.f32 %v619_v25, %v273_v26 }
 0x285   :  { %v285_v29 = vadd.f32 %v620_v27, %v279_v28 }
 0x287   :  { %693 = vmatmul.mubr.msk.f32.vlgmr.msra.gmra.mrb[2].mxu0 %vm249_vm4, %v285_v29 }
 0x288   :  { %703 = vmatprep.mubr.msk.f32.mxu0 %vm766_vm0, %v767_v3  ;;  %737 = vmatpush3.bf16.msra.mxu0 %v736_v33  ;;  %v621_v3 = vld [vmem:[%s960_s6 + $0x7] ss:$0 sm:$0xff] }
 0x289   :  { %738 = vmatprep.subr.bf16.mxu0 %v765_v0 }
 0x28c   :  { %740 = vmatpush3.bf16.msra.mxu0 %v739_v35 }
 0x35a   :  { %v364_v36 = vpop.f32.mrb[2].mxu0 }
 0x35b   :  { %v365_v37 = vadd.f32 %v621_v3, %v364_v36  ;;  %v694_v38 = vpop.f32.mrb[3].mxu0 }
 0x35c   :  { %v627_v38 = vld [vmem:[%s960_s6 + $0xb] ss:$0 sm:$0xff] }
 0x35d   :  { %757 = vtanh.f32 %v365_v37 }
 0x367   :  { %v758_v39 = vpop.eup %757 }
 0x368   :  { %v377_v40 = vmul.f32 %v758_v39, %v758_v39  ;;  %v369_v41 = vsel %vm249_vm4, %v758_v39, 0.0 }
 0x369   :  { %v370_v42 = vrot.slane %v369_v41, 4 }
 0x36a   :  { %v378_v43 = vsel %vm249_vm4, %v377_v40, 0.0  ;;  %v628_v40 = vld [vmem:[%s960_s6 + $0xc] ss:$0 sm:$0xff] }
 0x36b   :  { %v379_v44 = vrot.slane %v378_v43, 4  ;;  %v371_v45 = vadd.f32 %v370_v42, %v369_v41 }
 0x36d   :  { %v380_v46 = vadd.f32 %v379_v44, %v378_v43  ;;  %v372_v47 = vrot.slane %v371_v45, 2  ;;  %v629_v43 = vld [vmem:[%s960_s6 + $0xd] ss:$0 sm:$0xff] }
 0x36f   :  { %v373_v48 = vadd.f32 %v372_v47, %v371_v45  ;;  %v381_v49 = vrot.slane %v380_v46, 2 }
 0x371   :  { %v374_v50 = vrot.slane %v373_v48, 1  ;;  %v382_v51 = vadd.f32 %v381_v49, %v380_v46 }
 0x373   :  { %v375_v52 = vadd.f32 %v374_v50, %v373_v48  ;;  %v383_v53 = vrot.slane %v382_v51, 1 }
 0x375   :  { %v376_v54 = vmul.f32 0.125, %v375_v52  ;;  %v384_v55 = vadd.f32 %v383_v53, %v382_v51 }
 0x377   :  { %v385_v56 = vmul.f32 0.125, %v384_v55  ;;  %v386_v57 = vmul.f32 %v376_v54, %v376_v54  ;;  %v389_v61 = vsub.f32 %v758_v39, %v376_v54 }
 0x379   :  { %v387_v58 = vsub.f32 %v385_v56, %v386_v57 }
 0x37b   :  { %v388_v59 = vmax.f32 %v387_v58, 0.0 }
 0x37d   :  { %v390_v60 = vadd.f32 1e-05, %v388_v59 }
 0x37f   :  { %759 = vrsqrt.f32 %v390_v60 }
 0x389   :  { %v760_v62 = vpop.eup %759 }
 0x38a   :  { %v392_v1 = vmul.f32 %v760_v62, %v389_v61 }
 0x38c   :  { %v398_v4 = vmul.f32 %v623_v63, %v392_v1 }
 0x38e   :  { %v404_v5 = vadd.f32 %v624_v2, %v398_v4 }
 0x390   :  { %704 = vmatmul.mubr.msk.f32.vlgmr.msra.gmra.mrb[4].mxu0 %vm249_vm4, %v404_v5 }
 0x463   :  { %v483_v13 = vpop.f32.mrb[4].mxu0 }
 0x464   :  { %v484_v14 = vadd.f32 %v625_v12, %v483_v13  ;;  %v705_v15 = vpop.f32.mrb[5].mxu0 }
 0x466   :  { %761 = vtanh.f32 %v484_v14 }
 0x470   :  { %v762_v16 = vpop.eup %761 }
 0x471   :  { %v496_v17 = vmul.f32 %v762_v16, %v762_v16  ;;  %v488_v18 = vsel %vm249_vm4, %v762_v16, 0.0 }
 0x472   :  { %v489_v19 = vrot.slane %v488_v18, 4 }
 0x473   :  { %v497_v20 = vsel %vm249_vm4, %v496_v17, 0.0 }
 0x474   :  { %v498_v21 = vrot.slane %v497_v20, 4  ;;  %v490_v22 = vadd.f32 %v489_v19, %v488_v18 }
 0x476   :  { %v499_v23 = vadd.f32 %v498_v21, %v497_v20  ;;  %v491_v0 = vrot.slane %v490_v22, 2 }
 0x478   :  { %v492_v24 = vadd.f32 %v491_v0, %v490_v22  ;;  %v500_v25 = vrot.slane %v499_v23, 2 }
 0x47a   :  { %v493_v26 = vrot.slane %v492_v24, 1  ;;  %v501_v27 = vadd.f32 %v500_v25, %v499_v23 }
 0x47c   :  { %v494_v28 = vadd.f32 %v493_v26, %v492_v24  ;;  %v502_v29 = vrot.slane %v501_v27, 1 }
 0x47e   :  { %v495_v30 = vmul.f32 0.125, %v494_v28  ;;  %v503_v31 = vadd.f32 %v502_v29, %v501_v27 }
 0x480   :  { %v504_v32 = vmul.f32 0.125, %v503_v31  ;;  %v505_v33 = vmul.f32 %v495_v30, %v495_v30  ;;  %v508_v36 = vsub.f32 %v762_v16, %v495_v30 }
 0x482   :  { %v506_v34 = vsub.f32 %v504_v32, %v505_v33 }
 0x484   :  { %v507_v35 = vmax.f32 %v506_v34, 0.0 }
 0x486   :  { %v509_v3 = vadd.f32 1e-05, %v507_v35 }
 0x488   :  { %763 = vrsqrt.f32 %v509_v3 }
 0x492   :  { %v764_v37 = vpop.eup %763 }
 0x493   :  { %v511_v39 = vmul.f32 %v764_v37, %v508_v36 }
 0x495   :  { %v517_v41 = vmul.f32 %v627_v38, %v511_v39 }
 0x497   :  { %v523_v42 = vadd.f32 %v628_v40, %v517_v41 }
 0x499   :  { %715 = vmatmul.mubr.msk.f32.vlgmr.msra.gmra.mrb[2].mxu1 %vm249_vm4, %v523_v42 }
 0x56c   :  { %v602_v44 = vpop.f32.mrb[2].mxu1 }
 0x56d   :  { %v603_v45 = vadd.f32 %v629_v43, %v602_v44  ;;  %v716_v46 = vpop.f32.mrb[3].mxu1 }
 0x56f   :  { %606 = vst [vmem:[%s964_s7] sm:$0xff] %v603_v45 }

</bundles_post_ra>
